<compile_context>
chip_gen: v6e
topology: v6e:2x2x1
jax: 0.10.0
libtpu: 0.0.40
codegen_flags: <defaults>
</compile_context>

<pallas_src>
import numpy as np
import jax
import jax.numpy as jnp
from jax.experimental import pallas as pl
from jax.experimental.pallas import tpu as pltpu


_K = 3  # module kernel_size; padding = (K - 1) // 2 = 1


def _make_kernel(L, TL):
    """Fused Conv1d(K=3, s=1, pad=1) + bias + ReLU for one (batch, L-tile)."""
    need_mask = (L % TL) != 0  # last length-tile is partial

    def kernel(x_ref, h_ref, w_ref, b_ref, o_ref):
        # x_ref : (C_in, TL)       current length-tile of x (lane-dense)
        # h_ref : (C_in, 2)        [:,0] = left halo column, [:,1] = right halo
        # w_ref : (C_out, 3*C_in)  im2col weight, column index = k*C_in + ci
        # b_ref : (C_out, 1)       f32 bias
        # o_ref : (C_out, TL)      output tile
        xc = x_ref[...]
        lane = jax.lax.broadcasted_iota(jnp.int32, xc.shape, 1)

        # x[:, j-1]: rotate right by one lane (XLU), patch lane 0 with left halo.
        x_m1 = jnp.where(lane == 0, h_ref[:, 0:1], pltpu.roll(xc, 1, 1))

        # x[:, j+1]: rotate left by one lane, patch the last *valid* lane with
        # the right halo (zero at the global edge).  Folding the tail clamp into
        # this predicate removes the separate full-tile zeroing of xc: the only
        # out-of-range value a valid output column can see is exactly this one
        # (all other garbage lanes only feed output lanes that Pallas clips on
        # store, and the matmul never mixes lanes).
        if need_mask:
            last_valid = jnp.minimum(TL, L - pl.program_id(1) * TL) - 1
        else:
            last_valid = TL - 1
        x_p1 = jnp.where(lane == last_valid, h_ref[:, 1:2],
                         pltpu.roll(xc, TL - 1, 1))

        # Mini im2col: ONE MXU matmul with contraction depth 3*C_in.
        xim = jnp.concatenate([x_m1, xc, x_p1], axis=0)          # (3*C_in, TL)
        acc = jnp.dot(w_ref[...], xim, preferred_element_type=jnp.float32)

        acc = acc + b_ref[...]                                   # bias (bcast lanes)
        o_ref[...] = jnp.maximum(acc, 0.0).astype(o_ref.dtype)   # ReLU

    return kernel


def _vmem_budget_bytes():
    """Per-generation scoped-VMEM request.

    v5e/v6e have 128 MiB physical VMEM -> request ~96 MiB; v7x has 64 MiB per
    TensorCore -> cap at ~52 MiB to leave Mosaic internal-scratch headroom.
    """
    cap = 64 * 1024 * 1024
    try:
        cap = int(pltpu.get_tpu_info().vmem_capacity_bytes)
    except Exception:
        pass
    if cap >= 96 * 1024 * 1024:
        return 96 * 1024 * 1024
    return min(52 * 1024 * 1024, cap)


def _choose_length_tile(L, B, C_in, C_out, in_isz, out_isz, budget, length_tile):
    """Pick TL: either the full L, or a multiple of 128 derived from the VMEM
    budget, with a floor of 512 lanes and enough tiles to feed both v7x TCs."""
    if length_tile is not None:  # explicit override (tests / tuning)
        return L if L <= length_tile else max(128, (length_tile // 128) * 128)
    if L <= 512:
        return L  # one full-L, lane-dense tile per batch row
    # Per-lane VMEM bytes: double-buffered x tile + double-buffered out tile +
    # im2col operand & shifted copies + f32 accumulator.
    per_lane = 7 * C_in * in_isz + C_out * (2 * out_isz + 4)
    tl = max(128, (int(budget // 2) // max(1, per_lane)) // 128 * 128)
    # Occupancy: v7x shards 'parallel' grid axes across 2 TensorCores; keep at
    # least ~8 grid steps when B is tiny, but never drop below 512 lanes for it.
    if B < 8:
        want_nl = -(-8 // B)
        occ_cap = max(512, ((L // want_nl) // 128) * 128)
        tl = min(tl, occ_cap)
    tl = min(tl, (L // 128) * 128)  # never exceed the array extent
    return max(128, tl)


def conv_forward(x, weight, bias, *, stride=1, compute_dtype=None,
                 out_dtype=None, length_tile=None):
    """Conv1d(kernel_size=3, stride=1, padding=1, bias=True) + ReLU.

    x: (B, C_in, L) NCL -> (B, C_out, L) NCL.
    compute_dtype: optional MXU-operand dtype (e.g. bf16); accumulation, bias
    add and ReLU remain f32.  out_dtype: HBM output dtype (defaults to x.dtype;
    pass bf16 to halve writeback traffic in the memory-bound regime).
    """
    assert stride == 1, "module default stride=1"
    B, C_in, L = x.shape
    C_out, C_in_w, K = weight.shape
    assert C_in_w == C_in
    assert K == _K, "optimized kernel specialized for the module's kernel_size=3"
    # TODO(synk): generalize the in-kernel halo/roll construction to other odd K,
    # and add batch-blocking for the (nL == 1, large B) short-sequence regime.

    if out_dtype is None:
        out_dtype = x.dtype
    if compute_dtype is not None:
        x = x.astype(compute_dtype)
        weight = weight.astype(compute_dtype)

    in_isz = jnp.dtype(x.dtype).itemsize
    out_isz = jnp.dtype(out_dtype).itemsize
    budget = _vmem_budget_bytes()
    TL = _choose_length_tile(L, B, C_in, C_out, in_isz, out_isz, budget,
                             length_tile)
    nL = -(-L // TL)

    # Per-tile halo columns, merged into ONE (B, nL, C_in, 2) side array
    # (single tiny DMA per grid step; no full padded HBM copy of x).
    zcol = jnp.zeros((B, C_in, 1), x.dtype)
    if nL > 1:
        lh = jnp.concatenate([zcol, x[:, :, TL - 1:(nL - 1) * TL:TL]], axis=2)
        rh = jnp.concatenate([x[:, :, TL:(nL - 1) * TL + 1:TL], zcol], axis=2)
    else:
        lh, rh = zcol, zcol
    halo = jnp.moveaxis(jnp.stack([lh, rh], axis=-1), 1, 2)  # (B, nL, C_in, 2)

    # im2col weight: (C_out, 3*C_in), column index = k*C_in + ci
    # (k=0 pairs with x[j-1], k=1 with x[j], k=2 with x[j+1]).
    w2d = jnp.transpose(weight, (0, 2, 1)).reshape(C_out, K * C_in)
    b2d = bias.reshape(C_out, 1).astype(jnp.float32)

    kernel = _make_kernel(L, TL)

    # Rough per-step working set for the scoped-VMEM request.
    vmem_est = (2 * C_in * TL * in_isz            # double-buffered input tile
                + 2 * C_out * TL * out_isz        # double-buffered output tile
                + 3 * C_in * TL * in_isz          # im2col operand
                + C_out * TL * 4                  # f32 accumulator
                + K * C_out * C_in * in_isz       # resident weight
                + 2 * C_in * 128 * in_isz         # halo tile (lane padded)
                + C_out * 128 * 4)                # bias tile (lane padded)
    vmem_limit = int(min(budget, max(32 * 1024 * 1024, 2 * vmem_est)))

    # NOTE: if profiling shows exposed input DMA (tiny C_in, many tiles), add
    # pipeline_mode=pl.Buffered(3) on the x BlockSpec, VMEM permitting.
    return pl.pallas_call(
        kernel,
        out_shape=jax.ShapeDtypeStruct((B, C_out, L), out_dtype),
        grid=(B, nL),
        in_specs=[
            pl.BlockSpec((pl.Squeezed(), C_in, TL), lambda b, l: (b, 0, l)),
            pl.BlockSpec((pl.Squeezed(), pl.Squeezed(), C_in, 2),
                         lambda b, l: (b, l, 0, 0)),
            pl.BlockSpec((C_out, K * C_in), lambda b, l: (0, 0)),
            pl.BlockSpec((C_out, 1), lambda b, l: (0, 0)),
        ],
        out_specs=pl.BlockSpec((pl.Squeezed(), C_out, TL), lambda b, l: (b, 0, l)),
        compiler_params=pltpu.CompilerParams(
            dimension_semantics=("parallel", "parallel"),
            vmem_limit_bytes=vmem_limit,
        ),
    )(x, halo, w2d, b2d)


def _reference(x, weight, bias):
    C_out = weight.shape[0]
    y = jax.lax.conv_general_dilated(
        x, weight, window_strides=(1,), padding=((1, 1),),
        dimension_numbers=("NCH", "OIH", "NCH"),
    ) + bias.reshape(1, C_out, 1)
    return jnp.maximum(y, 0.0)


if __name__ == "__main__":
    key = jax.random.PRNGKey(0)
    K = 3

    # ---- Small shapes consistent with the module's forward (Conv1d on NCL). ----
    B, C_in, C_out, L = 2, 4, 8, 16
    kx, kw, kb, k2 = jax.random.split(key, 4)
    x = jax.random.normal(kx, (B, C_in, L), dtype=jnp.float32)
    bound = 1.0 / np.sqrt(C_in * K)
    w = jax.random.uniform(kw, (C_out, C_in, K), jnp.float32, -bound, bound)
    b = jax.random.uniform(kb, (C_out,), jnp.float32, -bound, bound)
    ref = _reference(x, w, b)

    out = jax.block_until_ready(conv_forward(x, w, b))
    assert out.shape == (B, C_out, L)
    np.testing.assert_allclose(np.asarray(out), np.asarray(ref),
                               rtol=1e-5, atol=1e-5)

    # bf16 MXU operands + bf16 HBM output; f32 accumulation / bias / ReLU.
    out_bf16 = jax.block_until_ready(
        conv_forward(x, w, b, compute_dtype=jnp.bfloat16, out_dtype=jnp.bfloat16))
    np.testing.assert_allclose(np.asarray(out_bf16.astype(jnp.float32)),
                               np.asarray(ref), rtol=5e-2, atol=5e-2)

    # ---- Multi-tile path: cross-tile halos + partial last tile (L % TL != 0). ----
    B2, C_in2, C_out2, L2 = 2, 8, 16, 200
    kx2, kw2, kb2, k3 = jax.random.split(k2, 4)
    x2 = jax.random.normal(kx2, (B2, C_in2, L2), dtype=jnp.float32)
    bound2 = 1.0 / np.sqrt(C_in2 * K)
    w2 = jax.random.uniform(kw2, (C_out2, C_in2, K), jnp.float32, -bound2, bound2)
    b2 = jax.random.uniform(kb2, (C_out2,), jnp.float32, -bound2, bound2)
    out2 = jax.block_until_ready(conv_forward(x2, w2, b2, length_tile=128))
    np.testing.assert_allclose(np.asarray(out2),
                               np.asarray(_reference(x2, w2, b2)),
                               rtol=1e-5, atol=1e-5)

    # ---- Auto tile selection (L > 512: VMEM-budget + dual-TC occupancy sizing). ----
    B3, C_in3, C_out3, L3 = 2, 8, 16, 1024
    kx3, kw3, kb3 = jax.random.split(k3, 3)
    x3 = jax.random.normal(kx3, (B3, C_in3, L3), dtype=jnp.float32)
    w3 = jax.random.uniform(kw3, (C_out3, C_in3, K), jnp.float32, -bound2, bound2)
    b3 = jax.random.uniform(kb3, (C_out3,), jnp.float32, -bound2, bound2)
    out3 = jax.block_until_ready(conv_forward(x3, w3, b3))
    np.testing.assert_allclose(np.asarray(out3),
                               np.asarray(_reference(x3, w3, b3)),
                               rtol=1e-5, atol=1e-5)

    print("KERNEL_OK")
</pallas_src>

<mosaic_0001>
module attributes {stable_mosaic.version = 11 : i64} {
  func.func @kernel(%arg0: i32, %arg1: i32, %arg2: memref<1x4x16xf32, #tpu.memory_space<vmem>>, %arg3: memref<1x1x4x2xf32, #tpu.memory_space<vmem>>, %arg4: memref<8x12xf32, #tpu.memory_space<vmem>>, %arg5: memref<8x1xf32, #tpu.memory_space<vmem>>, %arg6: memref<1x8x16xf32, #tpu.memory_space<vmem>>) attributes {dimension_semantics = [#tpu.dimension_semantics<parallel>, #tpu.dimension_semantics<parallel>], iteration_bounds = array<i64: 2, 1>, scalar_prefetch = 0 : i64, scratch_operands = 0 : i64, tpu.core_type = #tpu.core_type<tc>, window_params = [{transform_indices = @transform_0, window_bounds = array<i64: 1, 4, 16>}, {transform_indices = @transform_1, window_bounds = array<i64: 1, 1, 4, 2>}, {pipeline_mode = #tpu.pipeline_mode<synchronous>, transform_indices = @transform_2, window_bounds = array<i64: 8, 12>}, {pipeline_mode = #tpu.pipeline_mode<synchronous>, transform_indices = @transform_3, window_bounds = array<i64: 8, 1>}, {transform_indices = @transform_4, window_bounds = array<i64: 1, 8, 16>}]} {
    %c0 = arith.constant 0 : index
    %c0_0 = arith.constant 0 : index
    %c0_1 = arith.constant 0 : index
    %0 = vector.load %arg2[%c0, %c0_0, %c0_1] : memref<1x4x16xf32, #tpu.memory_space<vmem>>, vector<1x4x16xf32>
    %1 = vector.shape_cast %0 : vector<1x4x16xf32> to vector<4x16xf32>
    %2 = tpu.iota {dimensions = array<i32: 1>} : vector<4x16xi32>
    %c0_i32 = arith.constant 0 : i32
    %3 = vector.broadcast %c0_i32 : i32 to vector<4x16xi32>
    %4 = arith.cmpi eq, %2, %3 : vector<4x16xi32>
    %c0_2 = arith.constant 0 : index
    %c0_3 = arith.constant 0 : index
    %c0_4 = arith.constant 0 : index
    %c0_5 = arith.constant 0 : index
    %5 = vector.load %arg3[%c0_2, %c0_3, %c0_4, %c0_5] : memref<1x1x4x2xf32, #tpu.memory_space<vmem>>, vector<1x1x4x1xf32>
    %6 = vector.shape_cast %5 : vector<1x1x4x1xf32> to vector<4x1xf32>
    %c1_i32 = arith.constant 1 : i32
    %7 = tpu.dynamic_rotate %1 by %c1_i32 dim 1 : vector<4x16xf32>, i32 -> vector<4x16xf32>
    %8 = vector.shape_cast %6 : vector<4x1xf32> to vector<4x1xf32>
    %9 = vector.broadcast %8 : vector<4x1xf32> to vector<4x16xf32>
    %10 = arith.select %4, %9, %7 : vector<4x16xi1>, vector<4x16xf32>
    %c15_i32 = arith.constant 15 : i32
    %11 = vector.broadcast %c15_i32 : i32 to vector<4x16xi32>
    %12 = arith.cmpi eq, %2, %11 : vector<4x16xi32>
    %c0_6 = arith.constant 0 : index
    %c0_7 = arith.constant 0 : index
    %c0_8 = arith.constant 0 : index
    %c1 = arith.constant 1 : index
    %13 = vector.load %arg3[%c0_6, %c0_7, %c0_8, %c1] : memref<1x1x4x2xf32, #tpu.memory_space<vmem>>, vector<1x1x4x1xf32>
    %14 = vector.shape_cast %13 : vector<1x1x4x1xf32> to vector<4x1xf32>
    %c15_i32_9 = arith.constant 15 : i32
    %15 = tpu.dynamic_rotate %1 by %c15_i32_9 dim 1 : vector<4x16xf32>, i32 -> vector<4x16xf32>
    %16 = vector.shape_cast %14 : vector<4x1xf32> to vector<4x1xf32>
    %17 = vector.broadcast %16 : vector<4x1xf32> to vector<4x16xf32>
    %18 = arith.select %12, %17, %15 : vector<4x16xi1>, vector<4x16xf32>
    %19 = tpu.concatenate %10, %1, %18 in 0 : vector<4x16xf32>, vector<4x16xf32>, vector<4x16xf32> -> vector<12x16xf32>
    %c0_10 = arith.constant 0 : index
    %c0_11 = arith.constant 0 : index
    %20 = vector.load %arg4[%c0_10, %c0_11] : memref<8x12xf32, #tpu.memory_space<vmem>>, vector<8x12xf32>
    %cst = arith.constant dense<0.000000e+00> : vector<8x16xf32>
    %21 = tpu.matmul %20, %19, %cst {dimension_numbers = #tpu.dot_dimension_numbers<[1], [0], [0], [1], [0, 0, 1, 1], [], []>} : vector<8x12xf32>, vector<12x16xf32>, vector<8x16xf32> -> vector<8x16xf32>
    %c0_12 = arith.constant 0 : index
    %c0_13 = arith.constant 0 : index
    %22 = vector.load %arg5[%c0_12, %c0_13] : memref<8x1xf32, #tpu.memory_space<vmem>>, vector<8x1xf32>
    %23 = vector.broadcast %22 : vector<8x1xf32> to vector<8x16xf32>
    %24 = arith.addf %21, %23 : vector<8x16xf32>
    %cst_14 = arith.constant 0.000000e+00 : f32
    %25 = vector.broadcast %cst_14 : f32 to vector<8x16xf32>
    %26 = arith.maximumf %24, %25 : vector<8x16xf32>
    %c0_15 = arith.constant 0 : index
    %c0_16 = arith.constant 0 : index
    %c0_17 = arith.constant 0 : index
    %27 = vector.load %arg6[%c0_15, %c0_16, %c0_17] : memref<1x8x16xf32, #tpu.memory_space<vmem>>, vector<1x8x16xf32>
    %28 = vector.shape_cast %27 : vector<1x8x16xf32> to vector<8x16xf32>
    %29 = vector.shape_cast %26 : vector<8x16xf32> to vector<1x8x16xf32>
    tpu.vector_store %arg6[%c0_15, %c0_16, %c0_17], %29 {strides = array<i32>} : memref<1x8x16xf32, #tpu.memory_space<vmem>>, vector<1x8x16xf32>,
    return
  }
  func.func @transform_0(%arg0: i32, %arg1: i32) -> (i32, i32, i32) {
    %c0_i32 = arith.constant 0 : i32
    %c0_i32_0 = arith.constant 0 : i32
    return %arg0, %c0_i32, %arg1 : i32, i32, i32
  }
  func.func @transform_1(%arg0: i32, %arg1: i32) -> (i32, i32, i32, i32) {
    %c0_i32 = arith.constant 0 : i32
    %c0_i32_0 = arith.constant 0 : i32
    %c0_i32_1 = arith.constant 0 : i32
    return %arg0, %arg1, %c0_i32, %c0_i32_0 : i32, i32, i32, i32
  }
  func.func @transform_2(%arg0: i32, %arg1: i32) -> (i32, i32) {
    %c0_i32 = arith.constant 0 : i32
    %c0_i32_0 = arith.constant 0 : i32
    %c0_i32_1 = arith.constant 0 : i32
    return %c0_i32, %c0_i32_0 : i32, i32
  }
  func.func @transform_3(%arg0: i32, %arg1: i32) -> (i32, i32) {
    %c0_i32 = arith.constant 0 : i32
    %c0_i32_0 = arith.constant 0 : i32
    %c0_i32_1 = arith.constant 0 : i32
    return %c0_i32, %c0_i32_0 : i32, i32
  }
  func.func @transform_4(%arg0: i32, %arg1: i32) -> (i32, i32, i32) {
    %c0_i32 = arith.constant 0 : i32
    %c0_i32_0 = arith.constant 0 : i32
    return %arg0, %c0_i32, %arg1 : i32, i32, i32
  }
}

</mosaic_0001>

<bundles_post_ra>
// kernel: tpu_custom_call.1
= control target key start
LH: loop header
LB: loop body
LE: loop exit
PB: predicated region body
PF: predicated region fallthrough
CT: control target
= control target key end

     0   :  { %9 = vsyncpa [#allocation3], 0  ;;  %s778_s0 = inlined_call_operand.vmem [shape: f32[2,4,16], index: 0, kind: input, shape index: {}]   ;;  %s779_s1 = inlined_call_operand.vmem [shape: f32[2,1,4,2], index: 1, kind: input, shape index: {}]   ;;  %s780_s2 = inlined_call_operand.vmem [shape: f32[8,12], index: 2, kind: input, shape index: {}]   ;;  %s781_s3 = inlined_call_operand.vmem [shape: f32[8,1], index: 3, kind: input, shape index: {}]   ;;  %s782_s4 = inlined_call_operand.hbm [shape: f32[2,8,16], index: 4, kind: output, shape index: {}]  }
   0x1   :  { %11 = vsyncpa [#allocation3 + $0x1], 0  ;;  %s670_s15 = smov 0   ;;  %s672_s16 = smov 0  }
   0x2   :  { %s674_s17 = smov 0   ;;  %s676_s18 = smov 0  }
   0x3   :  { %s678_s19 = smov 0   ;;  %s680_s20 = smov 0  }
   0x4 LB: > { %s470_s21 = sadd.s32 4294967295, %s635_s20   ;;  %s471_s22 = sadd.s32 4294967294, %s635_s20   ;;  %s635_s20 = sphi %s680_s20, %s17_s20   ;;  %s631_s19 = sphi %s678_s19, %s789_s19   ;;  %s627_s18 = sphi %s676_s18, %s788_s18   ;;  %s623_s17 = sphi %s674_s17, %s787_s17   ;;  %s619_s16 = sphi %s672_s16, %s786_s16   ;;  %s615_s15 = sphi %s670_s15, %s785_s15  }
   0x5   : > { %s29_s23 = sadd.s32 1, %s631_s19  ;;  %s136_s24 = sadd.s32 1, %s623_s17 }
   0x6   : > { %p31_p0 = scmp.ge.s32.totalorder %s29_s23, 2  ;;  %p146_p1 = scmp.ne.s32.totalorder %s623_s17, %s619_s16 }
   0x7   : > { %p147_p2 = scmp.eq.s32.totalorder %s470_s21, 1  ;;  %p152_p3 = scmp.ne.s32.totalorder %s619_s16, %s615_s15 }
   0x8   : > { %s791_s23 = smov (%p31_p0, %s29_s23), 0  ;;  %p153_p5 = scmp.eq.s32.totalorder %s471_s22, 1 }
   0x9   : > { %p710_p4 = por %p147_p2, %p146_p1  ;;  %s131_s26 = ssub.s32 %s631_s19, %s791_s23 }
   0xa   : > { %p474_p6 = scmp.ge.s32.totalorder %s635_s20, 1  ;;  %p134_p7 = scmp.eq.s32.totalorder %s131_s26, 0 }
   0xb   : > { %p717_p8 = por %p153_p5, %p152_p3  ;;  %p197_p9 = scmp.lt.s32.totalorder %s635_s20, 3 }
   0xc   : > { %s723_s28 = scalar_select %p134_p7, %s623_s17, %s136_s24  }
   0xd   : > { %p198_p10 = pnand %p474_p6, %p197_p9 }
   0xe   : > { %p232_p11 = scmp.lt.s32.totalorder (!%p198_p10), %s627_s18, 1  ;;  %s639_s11 = smov (!%p198_p10), 16  }
   0xf   : > { %201 = sbr.rel (%p198_p10) target bundleno = 586 (0x24a), region = 36  ;;  %s642_s12 = smov (!%p198_p10), 113  }
  0x10   : > { %s643_s13 = smov (!%p198_p10), 127   ;;  %s229_s26 = sand.u32 (!%p198_p10), 1, %s619_s16  }
  0x14   : > { %v637_v0 = vmov 1   ;;  %v638_v1 = vmov 0   ;;  %s233_s29 = scalar_select %p232_p11, %s627_s18, 1  ;;  %vm251_vm0 = vcmask 1047680   ;;  %v640_v6 = vmov 0.0   ;;  %v283_v9 = vld [vmem:[%s781_s3] sm:$0xff] }
  0x15   : > { %556 = vset.pattern.permute.xlu1 %v637_v0  ;;  %558 = vset.pattern.permute.xlu0 %v638_v1  ;;  %vm641_vm1 = vmmov 0   ;;  %v247_v11 = vlaneseq  ;;  %vm280_vm4 = vcmask 1043456   ;;  %v282_v20 = vld [vmem:[%s780_s2] sm:$0xff]  ;;  %vm289_vm5 = vcmask 97280  }
  0x16   : > { %s476_s30 = sshll.u32 %s233_s29, 2  ;;  %487 = vmatprep.subr.mxu0 %v640_v6  ;;  %491 = vmatprep.mubr.msk.f32.mxu0 %vm641_vm1, %v640_v6  ;;  %s475_s29 = sshll.u32 %s229_s26, 3  ;;  %vm367_vm6 = vcmask 130048  }
  0x17   : > { %s238_s7 = scalar_lea.vmem %s778_s0, %s476_s30  ;;  %s245_s10 = scalar_lea.vmem %s779_s1, %s476_s30  ;;  %v248_v13 = vand.u32 127, %v247_v11 }
  0x18   : > { %v246_v2 = vld [vmem:[%s238_s7] sm:$0xf]  ;;  %s481_s30 = sshll.u32 %s627_s18, 7  ;;  %s231_s5 = scalar_lea.vmem [#allocation2], %s475_s29 }
  0x19   : > { %v250_v3 = vld [vmem:[%s245_s10] sm:$0xf]  ;;  %252 = vrot.lane.b32.xlu0 %v246_v2, %s639_s11  ;;  %vm249_vm2 = vcmp.eq.s32.totalorder %v248_v13, 0  ;;  %vm268_vm3 = vcmp.eq.s32.totalorder %v248_v13, 15  ;;  %v278_v14 = vrot.slane %v246_v2, 4  ;;  %s384_s6 = sshll.u32 %s231_s5, 4  ;;  %s382_s9 = scalar_lea.hbm %s782_s4, %s481_s30  ;;  %s385_s6 = int_to_ptr.vmem [resolvable:$true] %s384_s6 }
  0x1a   : > { %270 = vperm.xlu1 %556, %v250_v3   ;;  %s370_s10 = scalar_lea.sflag [#allocation3], %s229_s26 }
  0x1e   : > { %557 = vset.pattern.permute.xlu1 %v638_v1 }
  0x1f   : > { %260 = vperm.xlu1 %557, %v250_v3  }
  0x8b   : > { %v253_v4 = vpop.permute.xlu0 %252 }
  0x8c   : > { %v254_v5 = vsel %vm251_vm0, %v253_v4, %v246_v2 }
  0x8d   : > { %255 = vrot.lane.b32.xlu0 %v254_v5, %s639_s11  ;;  %s559_s11 = scalar_lea.vmem %s385_s6, 128 }
  0x8e   : > { %p560_p12 = scmp.ne.s32.totalorder %s385_s6, %s559_s11 }
  0x90   : > { %p561_p13 = pnand %p560_p12, %p710_p4 }
  0x92   : > { %p562_p0 = pneg %p561_p13 }
  0x95   : > { %v271_v10 = vpop.permute.xlu1 %270 }
  0x9a   : > { %v261_v12 = vpop.permute.xlu1 %260 }
  0xff   : > { %v256_v7 = vpop.permute.xlu0 %255 }
 0x100   : > { %v257_v8 = vsel %vm251_vm0, %v256_v7, %v246_v2 }
 0x101   : > { %264 = vrot.lane.b32.xlu1 %v257_v8, %s642_s12  ;;  %273 = vrot.lane.b32.xlu0 %v257_v8, %s643_s13  ;;  %s644_s12 = smov [#allocation2]  }
 0x102   : > { %s563_s18 = sshll.u32 %s644_s12, 4  ;;  %s564_s18 = int_to_ptr.vmem [resolvable:$false] %s563_s18 }
 0x103   : > { %s565_s13 = scalar_lea.vmem %s564_s18, 256  ;;  %p566_p1 = scmp.lt.s32.totalorder %s385_s6, %s564_s18 }
 0x104   : > { %p567_p2 = scmp.lt.s32.totalorder %s565_s13, %s559_s11 }
 0x105   : > { %286 = vperm.xlu0 %558, %v283_v9  }
 0x106   : > { %p568_p3 = por %p567_p2, %p566_p1 }
 0x108   : > { %p569_p5 = pnand %p568_p3, %p562_p0 }
 0x173   : > { %v265_v15 = vpop.permute.xlu1 %264  ;;  %v274_v16 = vpop.permute.xlu0 %273 }
 0x174   : > { %v267_v17 = vsel %vm249_vm2, %v261_v12, %v265_v15  ;;  %v276_v18 = vsel %vm268_vm3, %v271_v10, %v274_v16 }
 0x175   : > { %488 = vmatpush3.msk.msra.mxu0 %vm280_vm4, %v276_v18  ;;  %v281_v19 = vsel %vm280_vm4, %v267_v17, %v278_v14 }
 0x176   : > { %489 = vmatprep.subr.mxu0 %v640_v6 }
 0x177   : > { %490 = vmatpush3.msra.mxu0 %v281_v19 }
 0x178   : > { %492 = vmatmul.mubr.msk.f32.vlgmr.msra.gmra.mxu0 %vm289_vm5, %v282_v20 }
 0x180   : > { %v287_v21 = vpop.permute.xlu0 %286 }
 0x238   : > { %v362_v22 = vpop.f32.mrf.mxu0 }
 0x239   : > { %v363_v23 = vadd.f32 %v362_v22, %v287_v21 }
 0x23a   : > { %v493_v24 = vpop.f32.mrf.mxu0 }
 0x23b   : > { %v366_v25 = vmax.f32 %v363_v23, 0.0 }
 0x23d   : > { %368 = vst.msk [vmem:[%s231_s5] sm:$0xff] %vm367_vm6, %v366_v25 }
 0x23e   : > { %572 = shalt.err (!%p569_p5)
}
 0x23f   : > { %s573_s14 = scalar_lea.hbm %s382_s9, 128  ;;  %s577_s24 = scalar_lea.hbm %s782_s4, 256 }
 0x240   : > { %p574_p6 = scmp.ne.s32.totalorder %s382_s9, %s573_s14  ;;  %p578_p10 = scmp.lt.s32.totalorder %s382_s9, %s782_s4 }
 0x241   : > { %p579_p11 = scmp.lt.s32.totalorder %s577_s24, %s573_s14 }
 0x242   : > { %p575_p7 = pnand %p574_p6, %p710_p4 }
 0x243   : > { %p580_p12 = por %p579_p11, %p578_p10 }
 0x244   : > { %p576_p9 = pneg %p575_p7 }
 0x246   : > { %p581_p13 = pnand %p580_p12, %p576_p9 }
 0x248   : > { %584 = shalt.err (!%p581_p13)
}
 0x249   : > { %494 = dma.vmem_to_hbm [thread:$0]  (%p710_p4), %s385_s6, 128, %s382_s9, %s370_s10  }
 0x24a PF: > { %p500_p0 = scmp.ge.s32.totalorder %s635_s20, 2  ;;  %s396_s30 = sand.u32 1, %s615_s15  }
 0x24b   : > { %s397_s5 = scalar_lea.sflag [#allocation3], %s396_s30 }
 0x24c   : > { %p497_p1 = pnand %p500_p0, %p717_p8 }
 0x24e   : > { %p498_p2 = pneg %p497_p1 }
 0x250   : > { %610 = dma.done.wait (%p498_p2), %s397_s5, 128  }
 0x251   : > { %612 = vsyncadd (%p498_p2), %s397_s5, 4294967168  ;;  %s17_s20 = sadd.s32 1, %s635_s20   ;;  %s785_s15 = smov %s619_s16 }
 0x252   : > { %p14_p3 = scmp.ge.s32.totalorder %s17_s20, 4   ;;  %s786_s16 = smov %s623_s17 }
 0x253   : > { %s787_s17 = smov %s723_s28  ;;  %s788_s18 = smov %s631_s19 }
 0x254   : > { %s789_s19 = smov %s791_s23  ;;  %16 = sbr.rel (!%p14_p3) target bundleno = 4 (0x4), region = 74 }
 0x259   :  { %402 = vsyncpa [#allocation3], 1 }
 0x25a   :  { %404 = vsyncpa [#allocation3 + $0x1], 1 }

</bundles_post_ra>
